<compile_context>
chip_gen: v5e
topology: v5e:2x2
jax: 0.10.0
libtpu: 0.0.40
codegen_flags: <defaults>
</compile_context>

<pallas_src>
import functools

import jax
import jax.numpy as jnp
from jax.experimental import pallas as pl
from jax.experimental.pallas import tpu as pltpu


def _round_up(x, m):
    return ((x + m - 1) // m) * m


def deepfm_kernel(x_ref, w0_ref, b0_ref, w1_ref, b1_ref, w2_ref, bias_ref, out_ref,
                  *, n_fields, emb_dim):
    fe = n_fields * emb_dim
    tb = x_ref.shape[1]
    f_pad_rows = x_ref.shape[0] - fe          # first-order rows (zero padded to 8)

    # ---- FM first order: first-order rows live at [fe, fe + f_pad_rows); pad rows are 0 ----
    first = jnp.sum(x_ref[pl.ds(fe, f_pad_rows), :].astype(jnp.float32),
                    axis=0, keepdims=True)                                     # (1, tb)

    # ---- FM second order: slice the Ref (16-row aligned views), keep sq-sum as (1, tb) ----
    field_sum = jnp.zeros((emb_dim, tb), jnp.float32)
    sq_sum = jnp.zeros((1, tb), jnp.float32)
    for f in range(n_fields):                 # static unroll, F is small
        e = x_ref[pl.ds(f * emb_dim, emb_dim), :].astype(jnp.float32)
        field_sum = field_sum + e
        sq_sum = sq_sum + jnp.sum(e * e, axis=0, keepdims=True)
    second = 0.5 * (jnp.sum(field_sum * field_sum, axis=0, keepdims=True) - sq_sum)

    # ---- DNN: bf16 MXU matmul (W0 zero-padded over first-order rows), folded BN, eval dropout
    h = jnp.dot(w0_ref[...], x_ref[...], preferred_element_type=jnp.float32) + b0_ref[...]
    h = jnp.maximum(h, 0.0)
    h = jnp.dot(w1_ref[...], h, preferred_element_type=jnp.float32) + b1_ref[...]
    h = jnp.maximum(h, 0.0)
    dnn = jnp.sum(w2_ref[...] * h, axis=0, keepdims=True)                      # (1, tb) VPU+XLU

    out_ref[...] = jax.nn.sigmoid(first + second + dnn + bias_ref[...])        # lane dense


def prepare_kernel_params(params):
    """Fold BatchNorm (eval) into the Linear layers, transpose for batch-on-lanes layout."""
    eps = 1e-5
    scale0 = params["bn0_gamma"] / jnp.sqrt(params["bn0_var"] + eps)           # (h0,)
    shift0 = params["bn0_beta"] - scale0 * params["bn0_mean"]
    scale1 = params["bn1_gamma"] / jnp.sqrt(params["bn1_var"] + eps)           # (h1,)
    shift1 = params["bn1_beta"] - scale1 * params["bn1_mean"]

    w0 = (params["W0"] * scale0[None, :]).T                                    # (h0, F*E) f32
    b0 = (params["b0"][0] * scale0 + shift0)[:, None]                          # (h0, 1)
    w1 = (params["W1"] * scale1[None, :]).T                                    # (h1, h0)
    b1 = (params["b1"][0] * scale1 + shift1)[:, None]                          # (h1, 1)
    w2 = params["W2"]                                                          # (h1, 1)
    bias = (params["fm_bias"] + params["b2"]).reshape(1, 1)                    # fm_bias + head bias

    n_fields = params["num_fields"]
    f_pad = _round_up(n_fields, 8)
    # Zero-pad W0 over the fused first-order rows so the DNN matmul consumes the whole tile.
    w0 = jnp.pad(w0, ((0, 0), (0, f_pad)))                                     # (h0, F*E + f_pad)
    return dict(W0T=w0.astype(jnp.bfloat16), b0c=b0, W1T=w1, b1c=b1, w2c=w2,
                bias=bias, f_pad=f_pad)


def deepfm_forward(params, x_idx, *, max_batch_tile=8192):
    """Glue: fused gather of stacked embedding tables (bf16), then the fused Pallas kernel."""
    B, n_fields = x_idx.shape
    E = params["embedding_dim"]
    fe = n_fields * E

    kp = prepare_kernel_params(params)
    h0, h1 = kp["W0T"].shape[0], kp["W1T"].shape[0]
    f_pad = kp["f_pad"]
    rows = fe + f_pad

    # One offset-fused gather per stacked table, one transpose, all in bf16.
    flat_idx = x_idx + params["offsets"][None, :]                              # (B, F)
    emb2 = params["emb2"][flat_idx]                                            # (B, F, E) bf16
    f1 = params["emb1"][flat_idx]                                              # (B, F)    bf16
    combined = jnp.concatenate(
        [emb2.reshape(B, fe), jnp.pad(f1, ((0, 0), (0, f_pad - n_fields)))], axis=1)
    x_t = combined.T                                                           # (rows, B) bf16

    # Batch tile: lane-aligned (>=128, multiple of 128); >=2 grid steps when B allows it
    # (v7x has 2 TensorCores -> "parallel" grid axis shards across them).
    half = -(-B // 2)
    tb = max(128, min(max_batch_tile, _round_up(half, 128)))
    b_pad = _round_up(B, tb)
    if b_pad != B:
        x_t = jnp.pad(x_t, ((0, 0), (0, b_pad - B)))

    kernel = functools.partial(deepfm_kernel, n_fields=n_fields, emb_dim=E)

    out_row = pl.pallas_call(
        kernel,
        out_shape=jax.ShapeDtypeStruct((1, b_pad), jnp.float32),
        grid=(b_pad // tb,),
        in_specs=[
            pl.BlockSpec((rows, tb), lambda i: (0, i)),   # fused bf16 embedding tile
            pl.BlockSpec((h0, rows), lambda i: (0, 0)),   # W0 (bf16, BN folded, zero-padded)
            pl.BlockSpec((h0, 1), lambda i: (0, 0)),      # b0 (folded)
            pl.BlockSpec((h1, h0), lambda i: (0, 0)),     # W1 (folded)
            pl.BlockSpec((h1, 1), lambda i: (0, 0)),      # b1 (folded)
            pl.BlockSpec((h1, 1), lambda i: (0, 0)),      # w2 head column
            pl.BlockSpec((1, 1), lambda i: (0, 0)),       # fm_bias + b2
        ],
        out_specs=pl.BlockSpec((1, tb), lambda i: (0, i)),
        compiler_params=pltpu.CompilerParams(
            dimension_semantics=("parallel",),
            vmem_limit_bytes=32 * 1024 * 1024,
        ),
    )(x_t, kp["W0T"], kp["b0c"], kp["W1T"], kp["b1c"], kp["w2c"], kp["bias"])

    return out_row[0, :B].reshape(B, 1)


def make_params(key, sparse_sizes, embedding_dim, hidden_dims):
    F = len(sparse_sizes)
    E = embedding_dim
    h0, h1 = hidden_dims
    S = sum(sparse_sizes)
    k_e1, k_e2, k_l0, k_l1, k_l2, k_fm = jax.random.split(key, 6)

    # Stacked embedding tables (EmbeddingLayer, init_std=0.1), stored in bf16: halves the
    # dominant HBM stream; kernel and reference both consume the same quantized values.
    emb1 = (0.1 * jax.random.normal(k_e1, (S,), jnp.float32)).astype(jnp.bfloat16)
    emb2 = (0.1 * jax.random.normal(k_e2, (S, E), jnp.float32)).astype(jnp.bfloat16)

    offs = [0]
    for s in sparse_sizes[:-1]:
        offs.append(offs[-1] + s)
    offsets = jnp.array(offs, jnp.int32)

    in_dim = F * E

    def linear_init(key, fan_in, fan_out):
        # nn.Linear default init: U(-1/sqrt(fan_in), 1/sqrt(fan_in)) for W and b.
        kw, kb = jax.random.split(key)
        bound = 1.0 / float(fan_in) ** 0.5
        W = jax.random.uniform(kw, (fan_in, fan_out), jnp.float32, -bound, bound)
        b = jax.random.uniform(kb, (1, fan_out), jnp.float32, -bound, bound)
        return W, b

    W0, b0 = linear_init(k_l0, in_dim, h0)
    # Store W0 bf16-exact so the folded bf16 kernel weight matches the f32 reference.
    W0 = W0.astype(jnp.bfloat16).astype(jnp.float32)
    W1, b1 = linear_init(k_l1, h0, h1)
    W2, b2 = linear_init(k_l2, h1, 1)
    fm_bias = jax.random.normal(k_fm, (1, 1), jnp.float32)

    # BatchNorm1d fresh-init running stats (eval mode): gamma=1, beta=0, mean=0, var=1.
    return dict(
        emb1=emb1, emb2=emb2, offsets=offsets, num_fields=F, embedding_dim=E,
        W0=W0, b0=b0,
        bn0_gamma=jnp.ones((h0,), jnp.float32), bn0_beta=jnp.zeros((h0,), jnp.float32),
        bn0_mean=jnp.zeros((h0,), jnp.float32), bn0_var=jnp.ones((h0,), jnp.float32),
        W1=W1, b1=b1,
        bn1_gamma=jnp.ones((h1,), jnp.float32), bn1_beta=jnp.zeros((h1,), jnp.float32),
        bn1_mean=jnp.zeros((h1,), jnp.float32), bn1_var=jnp.ones((h1,), jnp.float32),
        W2=W2, b2=b2, fm_bias=fm_bias,
    )


def deepfm_reference(params, x_idx):
    """Pure-JAX reference mirroring the PyTorch forward (eval mode, use_dense=False)."""
    B, F = x_idx.shape
    E = params["embedding_dim"]
    eps = 1e-5
    hp = jax.lax.Precision.HIGHEST

    flat_idx = x_idx + params["offsets"][None, :]
    f1 = params["emb1"][flat_idx].astype(jnp.float32)            # (B, F)
    emb = params["emb2"][flat_idx].astype(jnp.float32)           # (B, F, E)

    first = jnp.sum(f1, axis=1, keepdims=True)
    s = jnp.sum(emb, axis=1)
    second = 0.5 * jnp.sum(s * s - jnp.sum(emb * emb, axis=1), axis=1, keepdims=True)
    fm_out = params["fm_bias"] + first + second

    def bn(h, g, b, m, v):
        return (h - m) / jnp.sqrt(v + eps) * g + b

    h = jnp.dot(emb.reshape(B, F * E), params["W0"], precision=hp) + params["b0"]
    h = jnp.maximum(bn(h, params["bn0_gamma"], params["bn0_beta"],
                       params["bn0_mean"], params["bn0_var"]), 0.0)
    h = jnp.dot(h, params["W1"], precision=hp) + params["b1"]
    h = jnp.maximum(bn(h, params["bn1_gamma"], params["bn1_beta"],
                       params["bn1_mean"], params["bn1_var"]), 0.0)
    dnn_out = jnp.dot(h, params["W2"], precision=hp) + params["b2"]
    return jax.nn.sigmoid(fm_out + dnn_out)


if __name__ == "__main__":
    # Small config consistent with the module: 4 sparse fields, embedding_dim=16, hidden=[32,32].
    feature_size_map = {"id_feature": [11, 13], "cate_feature": [7, 9], "dense_feature": [5]}
    sparse_sizes = feature_size_map["id_feature"] + feature_size_map["cate_feature"]
    embedding_dim = 16
    hidden_dims = [32, 32]
    B = 300   # exercises batch padding and a 2-step "parallel" grid

    key = jax.random.PRNGKey(0)
    kp_key, kx_key = jax.random.split(key)
    params = make_params(kp_key, sparse_sizes, embedding_dim, hidden_dims)

    # Input: one index per sparse field (what x[:, :sparse_field_dim].long() consumes).
    idx_keys = jax.random.split(kx_key, len(sparse_sizes))
    x_idx = jnp.stack(
        [jax.random.randint(idx_keys[i], (B,), 0, sparse_sizes[i], dtype=jnp.int32)
         for i in range(len(sparse_sizes))],
        axis=1,
    )  # (B, F) int32

    out = deepfm_forward(params, x_idx)
    out = jax.block_until_ready(out)

    ref = deepfm_reference(params, x_idx)
    assert out.shape == (B, 1)
    # Embeddings/W0 are bf16-exact in both paths; small slack covers MXU accumulation order
    # and the EUP sigmoid vs XLA's transcendental implementation.
    assert jnp.allclose(out, ref, atol=5e-4, rtol=5e-4), (
        float(jnp.max(jnp.abs(out - ref))))
    print("KERNEL_OK")
</pallas_src>

<mosaic_0001>
module attributes {stable_mosaic.version = 11 : i64} {
  func.func @deepfm_kernel(%arg0: i32, %arg1: memref<72x256xbf16, #tpu.memory_space<vmem>>, %arg2: memref<32x72xbf16, #tpu.memory_space<vmem>>, %arg3: memref<32x1xf32, #tpu.memory_space<vmem>>, %arg4: memref<32x32xf32, #tpu.memory_space<vmem>>, %arg5: memref<32x1xf32, #tpu.memory_space<vmem>>, %arg6: memref<32x1xf32, #tpu.memory_space<vmem>>, %arg7: memref<1x1xf32, #tpu.memory_space<vmem>>, %arg8: memref<1x256xf32, #tpu.memory_space<vmem>>) attributes {dimension_semantics = [#tpu.dimension_semantics<parallel>], iteration_bounds = array<i64: 2>, scalar_prefetch = 0 : i64, scratch_operands = 0 : i64, tpu.core_type = #tpu.core_type<tc>, window_params = [{transform_indices = @transform_0, window_bounds = array<i64: 72, 256>}, {pipeline_mode = #tpu.pipeline_mode<synchronous>, transform_indices = @transform_1, window_bounds = array<i64: 32, 72>}, {pipeline_mode = #tpu.pipeline_mode<synchronous>, transform_indices = @transform_2, window_bounds = array<i64: 32, 1>}, {pipeline_mode = #tpu.pipeline_mode<synchronous>, transform_indices = @transform_3, window_bounds = array<i64: 32, 32>}, {pipeline_mode = #tpu.pipeline_mode<synchronous>, transform_indices = @transform_4, window_bounds = array<i64: 32, 1>}, {pipeline_mode = #tpu.pipeline_mode<synchronous>, transform_indices = @transform_5, window_bounds = array<i64: 32, 1>}, {pipeline_mode = #tpu.pipeline_mode<synchronous>, transform_indices = @transform_6, window_bounds = array<i64: 1, 1>}, {transform_indices = @transform_7, window_bounds = array<i64: 1, 256>}]} {
    %c64 = arith.constant 64 : index
    %c0 = arith.constant 0 : index
    %0 = vector.load %arg1[%c64, %c0] : memref<72x256xbf16, #tpu.memory_space<vmem>>, vector<8x256xbf16>
    %1 = arith.extf %0 : vector<8x256xbf16> to vector<8x256xf32>
    %cst = arith.constant dense<0.000000e+00> : vector<256xf32>
    %2 = vector.multi_reduction <add>, %1, %cst [0] : vector<8x256xf32> to vector<256xf32>
    %3 = vector.shape_cast %2 : vector<256xf32> to vector<1x256xf32>
    %cst_0 = arith.constant 0.000000e+00 : f32
    %4 = vector.broadcast %cst_0 : f32 to vector<16x256xf32>
    %cst_1 = arith.constant 0.000000e+00 : f32
    %5 = vector.broadcast %cst_1 : f32 to vector<1x256xf32>
    %c0_2 = arith.constant 0 : index
    %c0_3 = arith.constant 0 : index
    %6 = vector.load %arg1[%c0_2, %c0_3] : memref<72x256xbf16, #tpu.memory_space<vmem>>, vector<16x256xbf16>
    %7 = arith.extf %6 : vector<16x256xbf16> to vector<16x256xf32>
    %8 = arith.addf %4, %7 : vector<16x256xf32>
    %9 = arith.mulf %7, %7 : vector<16x256xf32>
    %cst_4 = arith.constant dense<0.000000e+00> : vector<256xf32>
    %10 = vector.multi_reduction <add>, %9, %cst_4 [0] : vector<16x256xf32> to vector<256xf32>
    %11 = vector.shape_cast %10 : vector<256xf32> to vector<1x256xf32>
    %12 = arith.addf %5, %11 : vector<1x256xf32>
    %c16 = arith.constant 16 : index
    %c0_5 = arith.constant 0 : index
    %13 = vector.load %arg1[%c16, %c0_5] : memref<72x256xbf16, #tpu.memory_space<vmem>>, vector<16x256xbf16>
    %14 = arith.extf %13 : vector<16x256xbf16> to vector<16x256xf32>
    %15 = arith.addf %8, %14 : vector<16x256xf32>
    %16 = arith.mulf %14, %14 : vector<16x256xf32>
    %cst_6 = arith.constant dense<0.000000e+00> : vector<256xf32>
    %17 = vector.multi_reduction <add>, %16, %cst_6 [0] : vector<16x256xf32> to vector<256xf32>
    %18 = vector.shape_cast %17 : vector<256xf32> to vector<1x256xf32>
    %19 = arith.addf %12, %18 : vector<1x256xf32>
    %c32 = arith.constant 32 : index
    %c0_7 = arith.constant 0 : index
    %20 = vector.load %arg1[%c32, %c0_7] : memref<72x256xbf16, #tpu.memory_space<vmem>>, vector<16x256xbf16>
    %21 = arith.extf %20 : vector<16x256xbf16> to vector<16x256xf32>
    %22 = arith.addf %15, %21 : vector<16x256xf32>
    %23 = arith.mulf %21, %21 : vector<16x256xf32>
    %cst_8 = arith.constant dense<0.000000e+00> : vector<256xf32>
    %24 = vector.multi_reduction <add>, %23, %cst_8 [0] : vector<16x256xf32> to vector<256xf32>
    %25 = vector.shape_cast %24 : vector<256xf32> to vector<1x256xf32>
    %26 = arith.addf %19, %25 : vector<1x256xf32>
    %c48 = arith.constant 48 : index
    %c0_9 = arith.constant 0 : index
    %27 = vector.load %arg1[%c48, %c0_9] : memref<72x256xbf16, #tpu.memory_space<vmem>>, vector<16x256xbf16>
    %28 = arith.extf %27 : vector<16x256xbf16> to vector<16x256xf32>
    %29 = arith.addf %22, %28 : vector<16x256xf32>
    %30 = arith.mulf %28, %28 : vector<16x256xf32>
    %cst_10 = arith.constant dense<0.000000e+00> : vector<256xf32>
    %31 = vector.multi_reduction <add>, %30, %cst_10 [0] : vector<16x256xf32> to vector<256xf32>
    %32 = vector.shape_cast %31 : vector<256xf32> to vector<1x256xf32>
    %33 = arith.addf %26, %32 : vector<1x256xf32>
    %34 = arith.mulf %29, %29 : vector<16x256xf32>
    %cst_11 = arith.constant dense<0.000000e+00> : vector<256xf32>
    %35 = vector.multi_reduction <add>, %34, %cst_11 [0] : vector<16x256xf32> to vector<256xf32>
    %36 = vector.shape_cast %35 : vector<256xf32> to vector<1x256xf32>
    %37 = arith.subf %36, %33 : vector<1x256xf32>
    %cst_12 = arith.constant 5.000000e-01 : f32
    %38 = vector.broadcast %cst_12 : f32 to vector<1x256xf32>
    %39 = arith.mulf %38, %37 : vector<1x256xf32>
    %c0_13 = arith.constant 0 : index
    %c0_14 = arith.constant 0 : index
    %40 = vector.load %arg2[%c0_13, %c0_14] : memref<32x72xbf16, #tpu.memory_space<vmem>>, vector<32x72xbf16>
    %c0_15 = arith.constant 0 : index
    %c0_16 = arith.constant 0 : index
    %41 = vector.load %arg1[%c0_15, %c0_16] : memref<72x256xbf16, #tpu.memory_space<vmem>>, vector<72x256xbf16>
    %cst_17 = arith.constant dense<0.000000e+00> : vector<32x256xf32>
    %42 = tpu.matmul %40, %41, %cst_17 {dimension_numbers = #tpu.dot_dimension_numbers<[1], [0], [0], [1], [0, 0, 1, 1], [], []>} : vector<32x72xbf16>, vector<72x256xbf16>, vector<32x256xf32> -> vector<32x256xf32>
    %c0_18 = arith.constant 0 : index
    %c0_19 = arith.constant 0 : index
    %43 = vector.load %arg3[%c0_18, %c0_19] : memref<32x1xf32, #tpu.memory_space<vmem>>, vector<32x1xf32>
    %44 = vector.broadcast %43 : vector<32x1xf32> to vector<32x256xf32>
    %45 = arith.addf %42, %44 : vector<32x256xf32>
    %cst_20 = arith.constant 0.000000e+00 : f32
    %46 = vector.broadcast %cst_20 : f32 to vector<32x256xf32>
    %47 = arith.maximumf %45, %46 : vector<32x256xf32>
    %c0_21 = arith.constant 0 : index
    %c0_22 = arith.constant 0 : index
    %48 = vector.load %arg4[%c0_21, %c0_22] : memref<32x32xf32, #tpu.memory_space<vmem>>, vector<32x32xf32>
    %cst_23 = arith.constant dense<0.000000e+00> : vector<32x256xf32>
    %49 = tpu.matmul %48, %47, %cst_23 {dimension_numbers = #tpu.dot_dimension_numbers<[1], [0], [0], [1], [0, 0, 1, 1], [], []>} : vector<32x32xf32>, vector<32x256xf32>, vector<32x256xf32> -> vector<32x256xf32>
    %c0_24 = arith.constant 0 : index
    %c0_25 = arith.constant 0 : index
    %50 = vector.load %arg5[%c0_24, %c0_25] : memref<32x1xf32, #tpu.memory_space<vmem>>, vector<32x1xf32>
    %51 = vector.broadcast %50 : vector<32x1xf32> to vector<32x256xf32>
    %52 = arith.addf %49, %51 : vector<32x256xf32>
    %cst_26 = arith.constant 0.000000e+00 : f32
    %53 = vector.broadcast %cst_26 : f32 to vector<32x256xf32>
    %54 = arith.maximumf %52, %53 : vector<32x256xf32>
    %c0_27 = arith.constant 0 : index
    %c0_28 = arith.constant 0 : index
    %55 = vector.load %arg6[%c0_27, %c0_28] : memref<32x1xf32, #tpu.memory_space<vmem>>, vector<32x1xf32>
    %56 = vector.broadcast %55 : vector<32x1xf32> to vector<32x256xf32>
    %57 = arith.mulf %56, %54 : vector<32x256xf32>
    %cst_29 = arith.constant dense<0.000000e+00> : vector<256xf32>
    %58 = vector.multi_reduction <add>, %57, %cst_29 [0] : vector<32x256xf32> to vector<256xf32>
    %59 = vector.shape_cast %58 : vector<256xf32> to vector<1x256xf32>
    %60 = arith.addf %3, %39 : vector<1x256xf32>
    %61 = arith.addf %60, %59 : vector<1x256xf32>
    %c0_30 = arith.constant 0 : index
    %c0_31 = arith.constant 0 : index
    %62 = vector.load %arg7[%c0_30, %c0_31] : memref<1x1xf32, #tpu.memory_space<vmem>>, vector<1x1xf32>
    %63 = vector.broadcast %62 : vector<1x1xf32> to vector<1x256xf32>
    %64 = arith.addf %61, %63 : vector<1x256xf32>
    %65 = arith.negf %64 : vector<1x256xf32>
    %66 = math.exp %65 : vector<1x256xf32>
    %cst_32 = arith.constant 1.000000e+00 : f32
    %67 = vector.broadcast %cst_32 : f32 to vector<1x256xf32>
    %68 = arith.addf %67, %66 : vector<1x256xf32>
    %69 = arith.divf %67, %68 : vector<1x256xf32>
    %c0_33 = arith.constant 0 : index
    %c0_34 = arith.constant 0 : index
    %70 = vector.load %arg8[%c0_33, %c0_34] : memref<1x256xf32, #tpu.memory_space<vmem>>, vector<1x256xf32>
    tpu.vector_store %arg8[%c0_33, %c0_34], %69 {strides = array<i32>} : memref<1x256xf32, #tpu.memory_space<vmem>>, vector<1x256xf32>,
    return
  }
  func.func @transform_0(%arg0: i32) -> (i32, i32) {
    %c0_i32 = arith.constant 0 : i32
    %c0_i32_0 = arith.constant 0 : i32
    return %c0_i32, %arg0 : i32, i32
  }
  func.func @transform_1(%arg0: i32) -> (i32, i32) {
    %c0_i32 = arith.constant 0 : i32
    %c0_i32_0 = arith.constant 0 : i32
    %c0_i32_1 = arith.constant 0 : i32
    return %c0_i32, %c0_i32_0 : i32, i32
  }
  func.func @transform_2(%arg0: i32) -> (i32, i32) {
    %c0_i32 = arith.constant 0 : i32
    %c0_i32_0 = arith.constant 0 : i32
    %c0_i32_1 = arith.constant 0 : i32
    return %c0_i32, %c0_i32_0 : i32, i32
  }
  func.func @transform_3(%arg0: i32) -> (i32, i32) {
    %c0_i32 = arith.constant 0 : i32
    %c0_i32_0 = arith.constant 0 : i32
    %c0_i32_1 = arith.constant 0 : i32
    return %c0_i32, %c0_i32_0 : i32, i32
  }
  func.func @transform_4(%arg0: i32) -> (i32, i32) {
    %c0_i32 = arith.constant 0 : i32
    %c0_i32_0 = arith.constant 0 : i32
    %c0_i32_1 = arith.constant 0 : i32
    return %c0_i32, %c0_i32_0 : i32, i32
  }
  func.func @transform_5(%arg0: i32) -> (i32, i32) {
    %c0_i32 = arith.constant 0 : i32
    %c0_i32_0 = arith.constant 0 : i32
    %c0_i32_1 = arith.constant 0 : i32
    return %c0_i32, %c0_i32_0 : i32, i32
  }
  func.func @transform_6(%arg0: i32) -> (i32, i32) {
    %c0_i32 = arith.constant 0 : i32
    %c0_i32_0 = arith.constant 0 : i32
    %c0_i32_1 = arith.constant 0 : i32
    return %c0_i32, %c0_i32_0 : i32, i32
  }
  func.func @transform_7(%arg0: i32) -> (i32, i32) {
    %c0_i32 = arith.constant 0 : i32
    %c0_i32_0 = arith.constant 0 : i32
    return %c0_i32, %arg0 : i32, i32
  }
}

</mosaic_0001>

<bundles_post_ra>
// kernel: tpu_custom_call.1
= control target key start
LH: loop header
LB: loop body
LE: loop exit
PB: predicated region body
PF: predicated region fallthrough
CT: control target
= control target key end

     0   :  { %s1442_s0 = inlined_call_operand.hbm [shape: bf16[72,512], index: 0, kind: input, shape index: {}]   ;;  %s1443_s1 = inlined_call_operand.vmem [shape: bf16[32,72], index: 1, kind: input, shape index: {}]   ;;  %s1444_s2 = inlined_call_operand.vmem [shape: f32[32,1], index: 2, kind: input, shape index: {}]   ;;  %s1445_s3 = inlined_call_operand.vmem [shape: f32[32,32], index: 3, kind: input, shape index: {}]   ;;  %s1446_s4 = inlined_call_operand.vmem [shape: f32[32,1], index: 4, kind: input, shape index: {}]   ;;  %s1447_s5 = inlined_call_operand.vmem [shape: f32[32,1], index: 5, kind: input, shape index: {}]   ;;  %s1448_s6 = inlined_call_operand.<no memory space> [shape: f32[1,1], index: 6, kind: input, shape index: {}]   ;;  %s1449_s7 = inlined_call_operand.hbm [shape: f32[1,512], index: 7, kind: output, shape index: {}]  }
   0x1   :  { %v12_v0 = vstv %s1448_s6 }
   0x2   :  { %13 = vst [vmem:[#allocation2] sm:$0x1] %v12_v0 }
   0x3   :  { %14 = vsyncpa [#allocation4], 0 }
   0x4   :  { %16 = vsyncpa [#allocation4 + $0x1], 0 }
   0x5   :  { %17 = vsyncpa [#allocation5], 0 }
   0x6   :  { %19 = vsyncpa [#allocation5 + $0x1], 0  ;;  %s1201_s26 = smov 0   ;;  %s1203_s27 = smov 0  }
   0x7   :  { %s1205_s28 = smov 0   ;;  %s1207_s29 = smov 0  }
   0x8 LB: > { %s1222_s6 = sadd.s32 4294967295, %s1152_s29   ;;  %s917_s30 = sadd.s32 4294967294, %s1152_s29   ;;  %s1152_s29 = sphi %s1207_s29, %s1459_s29   ;;  %s1148_s28 = sphi %s1205_s28, %s1458_s28   ;;  %s1144_s27 = sphi %s1203_s27, %s1457_s27   ;;  %s1140_s26 = sphi %s1201_s26, %s1456_s26  }
   0x9   : > { %s1226_s8 = sadd.s32 1, %s1152_s29   ;;  %s32_s9 = sadd.s32 1, %s1148_s28 }
   0xa   : > { %s29_s10 = ssub.s32 %s1152_s29, %s1226_s8  ;;  %p39_p0 = scmp.ne.s32.totalorder %s1148_s28, %s1144_s27 }
   0xb   : > { %p30_p1 = scmp.eq.s32.totalorder %s29_s10, 0  ;;  %p40_p2 = scmp.eq.s32.totalorder %s1152_s29, 0 }
   0xc   : > { %p45_p3 = scmp.ne.s32.totalorder %s1144_s27, %s1140_s26  ;;  %p46_p4 = scmp.eq.s32.totalorder %s1222_s6, 0 }
   0xd   : > { %s1238_s11 = scalar_select %p30_p1, %s1148_s28, %s32_s9  }
   0xe   : > { %p41_p5 = por %p40_p2, %p39_p0  ;;  %p1240_p6 = por %p46_p4, %p45_p3 }
   0xf   : > { %p195_p7 = scmp.eq.s32.totalorder %s1222_s6, 1  ;;  %p201_p8 = scmp.eq.s32.totalorder %s917_s30, 1 }
  0x10   : > { %p919_p9 = scmp.ge.s32.totalorder %s1152_s29, 2  ;;  %p1007_p10 = scmp.lt.s32.totalorder %s1152_s29, 2 }
  0x11   : > { %p1247_p11 = por %p195_p7, %p39_p0  ;;  %p1251_p12 = por %p201_p8, %p45_p3 }
  0x12   : > { %s239_s15 = sand.u32 1, %s1148_s28   ;;  %s982_s16 = sshll.u32 %s1152_s29, 3 }
  0x13   : > { %s993_s17 = smul.u32 72, %s239_s15  ;;  %s248_s20 = scalar_lea.hbm %s1442_s0, %s982_s16 }
  0x14   : > { %p1260_p13 = pnand %p1007_p10, %p41_p5  ;;  %s249_s22 = sshll.u32 %s248_s20, 4  ;;  %s250_s22 = int_to_ptr.hbm [resolvable:$true] %s249_s22 }
  0x15   : > { %s243_s23 = scalar_lea.vmem [#allocation3], %s993_s17  ;;  %p922_p0 = scmp.ge.s32.totalorder %s1152_s29, 1 }
  0x16   : > { %s251_s24 = sshll.u32 %s243_s23, 4  ;;  %s240_s25 = scalar_lea.sflag [#allocation4], %s239_s15  ;;  %s252_s24 = int_to_ptr.vmem [resolvable:$true] %s251_s24 }
  0x17   : > { %s1056_s30 = sshra.s32 %s250_s22, 4  ;;  %p1060_p2 = pneg %p1260_p13  ;;  %s1057_s30 = int_to_ptr.hbm [resolvable:$true] %s1056_s30 }
  0x18   : > { %s1058_s9 = scalar_lea.hbm %s1057_s30, 72  ;;  %s1063_s18 = scalar_lea.hbm %s1442_s0, 144 }
  0x19   : > { %p1059_p1 = scmp.ne.s32.totalorder %s1057_s30, %s1058_s9  ;;  %p1064_p5 = scmp.lt.s32.totalorder %s1057_s30, %s1442_s0 }
  0x1a   : > { %p1065_p7 = scmp.lt.s32.totalorder %s1063_s18, %s1058_s9 }
  0x1b   : > { %p1061_p3 = pnand %p1060_p2, %p1059_p1 }
  0x1c   : > { %p1066_p8 = por %p1065_p7, %p1064_p5 }
  0x1d   : > { %p1062_p4 = pneg %p1061_p3 }
  0x1f   : > { %p1067_p10 = pnand %p1066_p8, %p1062_p4 }
  0x21   : > { %1070 = shalt.err (!%p1067_p10)
}
  0x22   : > { %s1154_s15 = smov 256   ;;  %s1155_s17 = smov 128  }
  0x23   : > { %s1156_s23 = smov 8   ;;  %p259_p1 = scmp.lt.s32.totalorder %s1152_s29, 3 }
  0x24   : > { %1002 = dma.hbm_to_vmem [thread:$0]  (!%p1260_p13), %s250_s22, 1152, %s252_s24, %s240_s25, %s1154_s15, %s1155_s17, %s1156_s23  }
  0x25   : > { %p260_p2 = pnand %p922_p0, %p259_p1 }
  0x26   : > { %s1279_s10 = sand.u32 (!%p260_p2), 1, %s1144_s27  }
  0x27   : > { %263 = sbr.rel (%p260_p2) target bundleno = 446 (0x1be), region = 48  ;;  %s266_s9 = scalar_lea.sflag (!%p260_p2), [#allocation4], %s1279_s10 }
  0x28   : > { %s994_s30 = smul.u32 (!%p260_p2), 72, %s1279_s10 }
  0x2a   : > { %s1283_s16 = scalar_lea.vmem (!%p260_p2), [#allocation3], %s994_s30 }
  0x2c   : > { %1131 = dma.done.wait (%p1240_p6), %s266_s9, 1152  }
  0x2d   : > { %1133 = vsyncadd (%p1240_p6), %s266_s9, 4294966144  ;;  %v1157_v1 = vmov 0   ;;  %v1290_v2 = vld [vmem:[%s1283_s16 + $0x40] sm:$0xff]  ;;  %vm559_vm0 = vcmask 1043456   ;;  %v958_v5 = vld [vmem:[%s1283_s16 + $0x30] sm:$0xf] }
  0x2e   : > { %1045 = vset.pattern.permute.xlu0 %v1157_v1  ;;  %1046 = vset.pattern.permute.xlu1 %v1157_v1  ;;  %v532_v3 = vunpack.c.l.b16 %v1290_v2  ;;  %v533_v4 = vunpack.c.h.b16 %v1290_v2  ;;  %v992_v8 = vld [vmem:[%s1283_s16 + $0x34] sm:$0xf0]  ;;  %v991_v9 = vld [vmem:[%s1283_s16 + $0x34] sm:$0xf]  ;;  %v960_v10 = vld [vmem:[%s1283_s16 + $0x38] sm:$0xf0] }
  0x2f   : > { %1047 = vset.pattern.permute.xlu2 %v1157_v1  ;;  %v476_v11 = vld [vmem:[%s1444_s2 + $0x18] sm:$0xff]  ;;  %v959_v14 = vor.u32 %v992_v8, %v958_v5  ;;  %v963_v15 = vor.u32 %v991_v9, %v960_v10  ;;  %v950_v16 = vld [vmem:[%s1283_s16 + $0x20] sm:$0xf]  ;;  %v990_v17 = vld [vmem:[%s1283_s16 + $0x24] sm:$0xf0]  ;;  %vm552_vm1 = vcmask 588800  }
  0x30   : > { %v542_v6 = vpack.c.b16 %v532_v3, %v532_v3  ;;  %v543_v7 = vpack.c.b16 %v533_v4, %v533_v4  ;;  %494 = vperm.xlu0 %1045, %v476_v11   ;;  %v989_v18 = vld [vmem:[%s1283_s16 + $0x24] sm:$0xf]  ;;  %v952_v19 = vld [vmem:[%s1283_s16 + $0x28] sm:$0xf0]  ;;  %v951_v21 = vor.u32 %v990_v17, %v950_v16  ;;  %v942_v23 = vld [vmem:[%s1283_s16 + $0x10] sm:$0xf] }
  0x31   : > { %v474_v20 = vld [vmem:[%s1444_s2 + $0x8] sm:$0xff]  ;;  %v955_v22 = vor.u32 %v989_v18, %v952_v19  ;;  %v475_v24 = vld [vmem:[%s1444_s2 + $0x10] sm:$0xff]  ;;  %v988_v25 = vld [vmem:[%s1283_s16 + $0x14] sm:$0xf0]  ;;  %vm640_vm2 = vcmask 261120   ;;  %s979_s23 = sshll.u32 %s1222_s6, 1 }
  0x32   : > { %v561_v12 = vsel %vm559_vm0, %v542_v6, 0  ;;  %v564_v13 = vsel %vm559_vm0, %v543_v7, 0  ;;  %484 = vperm.xlu1 %1046, %v474_v20   ;;  %v987_v26 = vld [vmem:[%s1283_s16 + $0x14] sm:$0xf]  ;;  %v944_v27 = vld [vmem:[%s1283_s16 + $0x18] sm:$0xf0]  ;;  %v943_v29 = vor.u32 %v988_v25, %v942_v23  ;;  %s842_s12 = scalar_lea.hbm %s1449_s7, %s979_s23 }
  0x33   : > { %569 = vmatpush.bf16.msra.mxu0 %v561_v12  ;;  %588 = vmatpush.bf16.msra.mxu1 %v564_v13  ;;  %v473_v28 = vld [vmem:[%s1444_s2] sm:$0xff]  ;;  %v947_v30 = vor.u32 %v987_v26, %v944_v27  ;;  %v986_v32 = vld [vmem:[%s1283_s16 + $0x4] sm:$0xf0]  ;;  %v936_v34 = vld [vmem:[%s1283_s16 + $0x8] sm:$0xf0]  ;;  %s846_s22 = sshll.u32 %s842_s12, 4  ;;  %s847_s22 = int_to_ptr.hbm [resolvable:$true] %s846_s22 }
  0x34   : > { %v934_v31 = vld [vmem:[%s1283_s16] sm:$0xf]  ;;  %v985_v33 = vld [vmem:[%s1283_s16 + $0x4] sm:$0xf]  ;;  %v619_v39 = vld [vmem:[%s1446_s4 + $0x18] sm:$0xff]  ;;  %vm823_vm10 = vcmask 1040384  }
  0x35   : > { %v935_v35 = vor.u32 %v986_v32, %v934_v31  ;;  %v939_v36 = vor.u32 %v985_v33, %v936_v34  ;;  %v618_v37 = vld [vmem:[%s1446_s4 + $0x10] sm:$0xff]  ;;  %v983_v38 = vld [vmem:[%s1443_s1] sm:$0xff]  ;;  %v720_v40 = vld [vmem:[%s1447_s5 + $0x8] sm:$0xff]  ;;  %s832_s24 = scalar_lea.sflag [#allocation5], %s1279_s10  ;;  %s1100_s25 = sshra.s32 %s847_s22, 4  ;;  %s1101_s25 = int_to_ptr.hbm [resolvable:$true] %s1100_s25 }
  0x36   : > { %v721_v41 = vld [vmem:[%s1447_s5 + $0x10] sm:$0xff]  ;;  %v773_v42 = vld [vmem:[#allocation2] sm:$0x1]  ;;  %v984_v43 = vld [vmem:[%s1443_s1 + $0x8] sm:$0xff]  ;;  %s1102_s18 = scalar_lea.hbm %s1101_s25, 2  ;;  %s1106_s15 = scalar_lea.hbm %s1449_s7, 4 }
  0x37   : > { %570 = vmatpush.bf16.msra.mxu0 %v959_v14  ;;  %589 = vmatpush.bf16.msra.mxu1 %v963_v15  ;;  %v616_v52 = vld [vmem:[%s1446_s4] sm:$0xff]  ;;  %v617_v1 = vld [vmem:[%s1446_s4 + $0x8] sm:$0xff]  ;;  %v722_v14 = vld [vmem:[%s1447_s5 + $0x18] sm:$0xff]  ;;  %p1103_p6 = scmp.ne.s32.totalorder %s1101_s25, %s1102_s18  ;;  %p1107_p3 = scmp.lt.s32.totalorder %s1101_s25, %s1449_s7 }
  0x38   : > { %489 = vperm.xlu0 %1045, %v475_v24   ;;  %622 = vperm.xlu2 %1047, %v616_v52   ;;  %v612_v11 = vld [vmem:[%s1445_s3] sm:$0xff]  ;;  %v613_v13 = vld [vmem:[%s1445_s3 + $0x8] sm:$0xff]  ;;  %v614_v15 = vld [vmem:[%s1445_s3 + $0x10] sm:$0xff]  ;;  %p1108_p4 = scmp.lt.s32.totalorder %s1106_s15, %s1102_s18 }
  0x39   : > { %v719_v12 = vld [vmem:[%s1447_s5] sm:$0xff]  ;;  %v615_v16 = vld [vmem:[%s1445_s3 + $0x18] sm:$0xff]  ;;  %p1104_p13 = pnand %p1103_p6, %p1247_p11 }
  0x3a   : > { %479 = vperm.xlu1 %1046, %v473_v28   ;;  %v319_v17 = vld [vmem:[%s1283_s16] sm:$0xff]  ;;  %v320_v18 = vld [vmem:[%s1283_s16 + $0x8] sm:$0xff]  ;;  %v349_v19 = vld [vmem:[%s1283_s16 + $0x10] sm:$0xff]  ;;  %p1109_p5 = por %p1108_p4, %p1107_p3 }
  0x3b   : > { %571 = vmatpush.bf16.msra.mxu0 %v951_v21  ;;  %590 = vmatpush.bf16.msra.mxu1 %v955_v22  ;;  %v321_v20 = vunpack.c.l.bf16 %v319_v17  ;;  %v323_v21 = vunpack.c.l.bf16 %v320_v18  ;;  %v350_v22 = vld [vmem:[%s1283_s16 + $0x18] sm:$0xff]  ;;  %v351_v23 = vunpack.c.l.bf16 %v349_v19  ;;  %v379_v25 = vld [vmem:[%s1283_s16 + $0x20] sm:$0xff]  ;;  %v380_v26 = vld [vmem:[%s1283_s16 + $0x28] sm:$0xff]  ;;  %v322_v27 = vunpack.c.h.bf16 %v319_v17  ;;  %p1105_p0 = pneg %p1104_p13 }
  0x3c   : > { %v353_v24 = vunpack.c.l.bf16 %v350_v22  ;;  %v324_v28 = vunpack.c.h.bf16 %v320_v18  ;;  %v382_v17 = vunpack.c.h.bf16 %v379_v25  ;;  %v306_v18 = vunpack.c.h.bf16 %v1290_v2 }
  0x3d   : > { %v355_v31 = vadd.f32 %v351_v23, %v321_v20  ;;  %v359_v32 = vmul.f32 %v351_v23, %v351_v23  ;;  %p1110_p7 = pnand %p1109_p5, %p1105_p0 }
  0x3e   : > { %v357_v33 = vadd.f32 %v353_v24, %v323_v21  ;;  %v361_v34 = vmul.f32 %v353_v24, %v353_v24  ;;  %v332_v52 = vmul.f32 %v324_v28, %v324_v28 }
  0x3f   : > { %572 = vmatpush.bf16.msra.mxu0 %v943_v29  ;;  %591 = vmatpush.bf16.msra.mxu1 %v947_v30  ;;  %v329_v29 = vmul.f32 %v321_v20, %v321_v20  ;;  %v331_v30 = vmul.f32 %v323_v21, %v323_v21  ;;  %v384_v21 = vunpack.c.h.bf16 %v380_v26 }
  0x40   : > { %632 = vperm.xlu0 %1045, %v618_v37   ;;  %627 = vperm.xlu2 %1047, %v617_v1   ;;  %v1379_v37 = vld [vmem:[%s1283_s16 + $0x30] sm:$0xff] }
  0x42   : > { %637 = vperm.xlu1 %1046, %v619_v39   ;;  %v333_v39 = vadd.f32 %v331_v30, %v329_v29 }
  0x43   : > { %573 = vmatpush.bf16.msra.mxu0 %v935_v35  ;;  %592 = vmatpush.bf16.msra.mxu1 %v939_v36  ;;  %v381_v35 = vunpack.c.l.bf16 %v379_v25  ;;  %v383_v36 = vunpack.c.l.bf16 %v380_v26 }
  0x46   : > { %964 = vmatmul.msk.bf16.vlgmr.msra.gmra.mxu0 %vm552_vm1, %v983_v38  ;;  %966 = vmatmul.msk.bf16.vlgmr.msra.gmra.mxu1 %vm552_vm1, %v983_v38  ;;  %v1382_v38 = vld [vmem:[%s1283_s16 + $0x38] sm:$0xff]  ;;  %s923_s16 = sshll.u32 %s1279_s10, 1 }
  0x47   : > { %s300_s6 = scalar_lea.vmem [#allocation6], %s923_s16 }
  0x48   : > { %730 = vperm.xlu0 %1045, %v720_v40   ;;  %725 = vperm.xlu2 %1047, %v719_v12   ;;  %v411_v40 = vunpack.c.l.bf16 %v1379_v37  ;;  %v305_v12 = vunpack.c.l.bf16 %v1290_v2  ;;  %v412_v2 = vunpack.c.h.bf16 %v1379_v37  ;;  %s844_s21 = sshll.u32 %s300_s6, 4  ;;  %s845_s21 = int_to_ptr.vmem [resolvable:$true] %s844_s21 }
  0x4a   : > { %735 = vperm.xlu1 %1046, %v721_v41   ;;  %v413_v41 = vunpack.c.l.bf16 %v1382_v38 }
  0x50   : > { %776 = vperm.xlu0 %1045, %v773_v42   ;;  %740 = vperm.xlu2 %1047, %v722_v14   ;;  %v363_v42 = vadd.f32 %v361_v34, %v359_v32 }
  0x56   : > { %965 = vmatmul.msk.bf16.gmra.mxu0 %vm552_vm1, %v984_v43  ;;  %967 = vmatmul.msk.bf16.gmra.mxu1 %vm552_vm1, %v984_v43  ;;  %v385_v43 = vadd.f32 %v381_v35, %v355_v31  ;;  %v307_v31 = vrot.slane %v305_v12, 4 }
  0xa2   : > { %v495_v48 = vpop.permute.xlu0 %494 }
  0xa4   : > { %v485_v49 = vpop.permute.xlu1 %484 }
  0xaa   : > { %v490_v53 = vpop.permute.xlu0 %489 }
  0xac   : > { %v480_v60 = vpop.permute.xlu1 %479 }
  0xc3   : > { %v575_v44 = vpop.f32.mrf.mxu0  ;;  %v594_v45 = vpop.f32.mrf.mxu1 }
  0xc4   : > { %v576_v3 = vadd.f32 %v575_v44, %v480_v60  ;;  %v595_v4 = vadd.f32 %v594_v45, %v480_v60  ;;  %v387_v44 = vadd.f32 %v383_v36, %v357_v33  ;;  %v330_v45 = vmul.f32 %v322_v27, %v322_v27 }
  0xc6   : > { %v604_v9 = vmax.f32 %v576_v3, 0.0  ;;  %v605_v10 = vmax.f32 %v595_v4, 0.0  ;;  %v1386_v4 = vpop.permute.xlu2 %622 }
  0xcb   : > { %v577_v46 = vpop.f32.mrf.mxu0  ;;  %v596_v47 = vpop.f32.mrf.mxu1 }
  0xcc   : > { %v578_v61 = vadd.f32 %v577_v46, %v485_v49  ;;  %v597_v62 = vadd.f32 %v596_v47, %v485_v49  ;;  %v389_v46 = vmul.f32 %v381_v35, %v381_v35  ;;  %v391_v47 = vmul.f32 %v383_v36, %v383_v36 }
  0xcd   : > { %v334_v49 = vrot.slane %v333_v39, 4  ;;  %v313_v35 = vrot.slane %v306_v18, 4 }
  0xce   : > { %v606_v7 = vmax.f32 %v578_v61, 0.0  ;;  %v607_v8 = vmax.f32 %v597_v62, 0.0 }
  0xd3   : > { %v580_v50 = vpop.f32.mrf.mxu0  ;;  %v599_v51 = vpop.f32.mrf.mxu1 }
  0xd4   : > { %v581_v56 = vadd.f32 %v580_v50, %v490_v53  ;;  %v600_v57 = vadd.f32 %v599_v51, %v490_v53  ;;  %v419_v50 = vmul.f32 %v411_v40, %v411_v40  ;;  %v421_v51 = vmul.f32 %v413_v41, %v413_v41 }
  0xd5   : > { %v364_v53 = vrot.slane %v363_v42, 4 }
  0xd6   : > { %v608_v5 = vmax.f32 %v581_v56, 0.0  ;;  %v609_v6 = vmax.f32 %v600_v57, 0.0  ;;  %v417_v56 = vadd.f32 %v413_v41, %v387_v44  ;;  %v340_v57 = vadd.f32 %v332_v52, %v330_v45 }
  0xd7   : > { %v423_v60 = vadd.f32 %v421_v51, %v419_v50  ;;  %v365_v62 = vadd.f32 %v364_v53, %v363_v42  ;;  %v392_v41 = vmul.f32 %v384_v21, %v384_v21  ;;  %v414_v44 = vunpack.c.h.bf16 %v1382_v38 }
  0xd8   : > { %v441_v3 = vmul.f32 %v417_v56, %v417_v56  ;;  %v420_v50 = vmul.f32 %v412_v2, %v412_v2  ;;  %v1392_v51 = vadd.f32 %v307_v31, %v305_v12  ;;  %v1394_v52 = vadd.f32 %v313_v35, %v306_v18 }
  0xd9   : > { %v422_v56 = vmul.f32 %v414_v44, %v414_v44 }
  0xdb   : > { %v582_v54 = vpop.f32.mrf.mxu0  ;;  %v601_v55 = vpop.f32.mrf.mxu1 }
  0xdc   : > { %v583_v58 = vadd.f32 %v582_v54, %v495_v48  ;;  %v602_v59 = vadd.f32 %v601_v55, %v495_v48  ;;  %v352_v48 = vunpack.c.h.bf16 %v349_v19  ;;  %v354_v54 = vunpack.c.h.bf16 %v350_v22 }
  0xdd   : > { %v415_v55 = vadd.f32 %v411_v40, %v385_v43  ;;  %v390_v40 = vmul.f32 %v382_v17, %v382_v17 }
  0xde   : > { %v610_v63 = vmax.f32 %v583_v58, 0.0  ;;  %v611_v0 = vmax.f32 %v602_v59, 0.0  ;;  %v393_v58 = vadd.f32 %v391_v47, %v389_v46  ;;  %v335_v59 = vadd.f32 %v334_v49, %v333_v39 }
  0xdf   : > { %v360_v61 = vmul.f32 %v352_v48, %v352_v48  ;;  %v439_v1 = vmul.f32 %v415_v55, %v415_v55  ;;  %v358_v20 = vadd.f32 %v354_v54, %v324_v28  ;;  %v628_v28 = vpop.permute.xlu2 %627 }
  0xe0   : > { %665 = vmatpush.msra.mxu2 %v610_v63  ;;  %694 = vmatpush.msra.mxu3 %v611_v0  ;;  %v341_v63 = vrot.slane %v340_v57, 4  ;;  %v362_v0 = vmul.f32 %v354_v54, %v354_v54 }
  0xe1   : > { %v388_v39 = vadd.f32 %v384_v21, %v358_v20 }
  0xe2   : > { %666 = vmatpush.msra.mxu2 %v608_v5  ;;  %695 = vmatpush.msra.mxu3 %v609_v6  ;;  %v394_v5 = vrot.slane %v393_v58, 4  ;;  %v370_v6 = vadd.f32 %v362_v0, %v360_v61 }
  0xe3   : > { %v418_v54 = vadd.f32 %v414_v44, %v388_v39 }
  0xe4   : > { %667 = vmatpush.msra.mxu2 %v606_v7  ;;  %696 = vmatpush.msra.mxu3 %v607_v8  ;;  %v336_v7 = vrot.slane %v335_v59, 2  ;;  %v424_v8 = vrot.slane %v423_v60, 4  ;;  %v395_v19 = vadd.f32 %v394_v5, %v393_v58  ;;  %v633_v58 = vpop.permute.xlu0 %632 }
  0xe5   : > { %v442_v61 = vmul.f32 %v418_v54, %v418_v54 }
  0xe6   : > { %668 = vmatpush.msra.mxu2 %v604_v9  ;;  %697 = vmatpush.msra.mxu3 %v605_v10  ;;  %v366_v9 = vrot.slane %v365_v62, 2  ;;  %v342_v10 = vadd.f32 %v341_v63, %v340_v57  ;;  %v337_v22 = vadd.f32 %v336_v7, %v335_v59  ;;  %v425_v23 = vadd.f32 %v424_v8, %v423_v60 }
  0xe7   : > { %968 = vmatmul.msk.f32.vlgmr.msra.gmra.mxu2 %vm640_vm2, %v612_v11  ;;  %972 = vmatmul.msk.f32.vlgmr.msra.gmra.mxu3 %vm640_vm2, %v612_v11  ;;  %v371_v11 = vrot.slane %v370_v6, 4  ;;  %v396_v36 = vrot.slane %v395_v19, 2 }
  0xe8   : > { %v367_v29 = vadd.f32 %v366_v9, %v365_v62  ;;  %v343_v30 = vrot.slane %v342_v10, 2  ;;  %v426_v25 = vrot.slane %v425_v23, 2 }
  0xe9   : > { %v372_v24 = vadd.f32 %v371_v11, %v370_v6  ;;  %v397_v53 = vadd.f32 %v396_v36, %v395_v19 }
  0xea   : > { %v368_v26 = vrot.slane %v367_v29, 1  ;;  %v344_v42 = vadd.f32 %v343_v30, %v342_v10  ;;  %v427_v59 = vadd.f32 %v426_v25, %v425_v23 }
  0xeb   : > { %v373_v33 = vrot.slane %v372_v24, 2  ;;  %v398_v7 = vrot.slane %v397_v53, 1 }
  0xec   : > { %v345_v60 = vrot.slane %v344_v42, 1  ;;  %v369_v62 = vadd.f32 %v368_v26, %v367_v29  ;;  %v731_v26 = vpop.permute.xlu0 %730 }
  0xed   : > { %v374_v43 = vadd.f32 %v373_v33, %v372_v24  ;;  %v399_v36 = vadd.f32 %v398_v7, %v397_v53 }
  0xef   : > { %969 = vmatmul.msk.f32.gmra.mxu2 %vm640_vm2, %v613_v13  ;;  %973 = vmatmul.msk.f32.gmra.mxu3 %vm640_vm2, %v613_v13  ;;  %v375_v38 = vrot.slane %v374_v43, 1 }
  0xf7   : > { %970 = vmatmul.msk.f32.gmra.mxu2 %vm640_vm2, %v614_v15  ;;  %974 = vmatmul.msk.f32.gmra.mxu3 %vm640_vm2, %v614_v15  ;;  %v443_v15 = vadd.f32 %v441_v3, %v439_v1  ;;  %v430_v1 = vadd.f32 %v422_v56, %v420_v50  ;;  %v638_v3 = vpop.permute.xlu1 %637 }
  0xf9   : > { %v444_v32 = vrot.slane %v443_v15, 4  ;;  %v431_v12 = vrot.slane %v430_v1, 4 }
  0xfb   : > { %v445_v47 = vadd.f32 %v444_v32, %v443_v15  ;;  %v428_v15 = vrot.slane %v427_v59, 1  ;;  %v432_v24 = vadd.f32 %v431_v12, %v430_v1 }
  0xfd   : > { %v446_v63 = vrot.slane %v445_v47, 2  ;;  %v429_v50 = vadd.f32 %v428_v15, %v427_v59 }
  0xff   : > { %971 = vmatmul.msk.f32.gmra.mxu2 %vm640_vm2, %v615_v16  ;;  %975 = vmatmul.msk.f32.gmra.mxu3 %vm640_vm2, %v615_v16  ;;  %v356_v16 = vadd.f32 %v352_v48, %v322_v27  ;;  %v338_v27 = vrot.slane %v337_v22, 1  ;;  %v400_v48 = vadd.f32 %v392_v41, %v390_v40 }
 0x101   : > { %v386_v34 = vadd.f32 %v382_v17, %v356_v16  ;;  %v339_v55 = vadd.f32 %v338_v27, %v337_v22  ;;  %v401_v37 = vrot.slane %v400_v48, 4  ;;  %v346_v16 = vadd.f32 %v345_v60, %v344_v42 }
 0x102   : > { %v376_v17 = vadd.f32 %v375_v38, %v374_v43  ;;  %v447_v22 = vadd.f32 %v446_v63, %v445_v47  ;;  %v315_v43 = vrot.slane %v1394_v52, 2  ;;  %v736_v47 = vpop.permute.xlu1 %735 }
 0x103   : > { %v416_v49 = vadd.f32 %v412_v2, %v386_v34  ;;  %v402_v0 = vadd.f32 %v401_v37, %v400_v48  ;;  %v377_v21 = vadd.f32 %v369_v62, %v339_v55  ;;  %v433_v34 = vrot.slane %v432_v24, 2 }
 0x104   : > { %v378_v39 = vadd.f32 %v376_v17, %v346_v16  ;;  %v448_v53 = vrot.slane %v447_v22, 1 }
 0x105   : > { %v440_v57 = vmul.f32 %v416_v49, %v416_v49  ;;  %v403_v11 = vrot.slane %v402_v0, 2  ;;  %v434_v2 = vadd.f32 %v433_v34, %v432_v24  ;;  %v407_v37 = vadd.f32 %v399_v36, %v377_v21 }
 0x107   : > { %v450_v8 = vadd.f32 %v442_v61, %v440_v57  ;;  %v404_v23 = vadd.f32 %v403_v11, %v402_v0  ;;  %v449_v11 = vadd.f32 %v448_v53, %v447_v22 }
 0x109   : > { %v451_v18 = vrot.slane %v450_v8, 4  ;;  %v405_v33 = vrot.slane %v404_v23, 1 }
 0x10b   : > { %v406_v41 = vadd.f32 %v405_v33, %v404_v23 }
 0x10d   : > { %v408_v57 = vadd.f32 %v406_v41, %v378_v39 }
 0x16a   : > { %v670_v13 = vpop.f32.mrf.mxu2  ;;  %v699_v14 = vpop.f32.mrf.mxu3 }
 0x16b   : > { %v671_v5 = vadd.f32 %v670_v13, %v1386_v4  ;;  %v700_v6 = vadd.f32 %v699_v14, %v1386_v4  ;;  %v452_v4 = vadd.f32 %v451_v18, %v450_v8  ;;  %v726_v14 = vpop.permute.xlu2 %725 }
 0x16d   : > { %v711_v29 = vmax.f32 %v671_v5, 0.0  ;;  %v712_v35 = vmax.f32 %v700_v6, 0.0  ;;  %v453_v40 = vrot.slane %v452_v4, 2  ;;  %v316_v5 = vadd.f32 %v315_v43, %v1394_v52 }
 0x16f   : > { %v454_v42 = vadd.f32 %v453_v40, %v452_v4  ;;  %v743_v48 = vmul.f32 %v726_v14, %v711_v29  ;;  %v744_v49 = vmul.f32 %v726_v14, %v712_v35  ;;  %v777_v40 = vpop.permute.xlu0 %776 }
 0x170   : > { %v779_v41 = vperm.slane %v777_v40, 0 }
 0x171   : > { %v455_v61 = vrot.slane %v454_v42, 1 }
 0x172   : > { %v673_v45 = vpop.f32.mrf.mxu2  ;;  %v702_v46 = vpop.f32.mrf.mxu3 }
 0x173   : > { %v674_v9 = vadd.f32 %v673_v45, %v628_v28  ;;  %v703_v10 = vadd.f32 %v702_v46, %v628_v28  ;;  %v309_v28 = vrot.slane %v1392_v51, 2  ;;  %v435_v46 = vrot.slane %v434_v2, 1  ;;  %v741_v59 = vpop.permute.xlu2 %740 }
 0x174   : > { %v456_v16 = vadd.f32 %v455_v61, %v454_v42 }
 0x175   : > { %v713_v31 = vmax.f32 %v674_v9, 0.0  ;;  %v714_v32 = vmax.f32 %v703_v10, 0.0  ;;  %v436_v38 = vadd.f32 %v435_v46, %v434_v2  ;;  %v310_v1 = vadd.f32 %v309_v28, %v1392_v51 }
 0x176   : > { %v437_v10 = vadd.f32 %v429_v50, %v407_v37 }
 0x177   : > { %v745_v44 = vmul.f32 %v731_v26, %v713_v31  ;;  %v746_v45 = vmul.f32 %v731_v26, %v714_v32  ;;  %v438_v15 = vadd.f32 %v436_v38, %v408_v57 }
 0x178   : > { %v457_v21 = vsub.f32 %v449_v11, %v437_v10 }
 0x179   : > { %v751_v63 = vadd.f32 %v745_v44, %v743_v48  ;;  %v760_v0 = vadd.f32 %v746_v45, %v744_v49  ;;  %v458_v51 = vsub.f32 %v456_v16, %v438_v15 }
 0x17a   : > { %v676_v19 = vpop.f32.mrf.mxu2  ;;  %v705_v20 = vpop.f32.mrf.mxu3  ;;  %v459_v4 = vmul.f32 0.5, %v457_v21 }
 0x17b   : > { %v677_v13 = vadd.f32 %v676_v19, %v633_v58  ;;  %v706_v30 = vadd.f32 %v705_v20, %v633_v58  ;;  %v317_v20 = vrot.slane %v316_v5, 1  ;;  %v460_v31 = vmul.f32 0.5, %v458_v51 }
 0x17d   : > { %v715_v27 = vmax.f32 %v677_v13, 0.0  ;;  %v716_v25 = vmax.f32 %v706_v30, 0.0  ;;  %v318_v30 = vadd.f32 %v317_v20, %v316_v5 }
 0x17f   : > { %v747_v54 = vmul.f32 %v736_v47, %v715_v27  ;;  %v748_v55 = vmul.f32 %v736_v47, %v716_v25  ;;  %v770_v39 = vadd.f32 %v460_v31, %v318_v30 }
 0x181   : > { %v752_v8 = vadd.f32 %v751_v63, %v747_v54  ;;  %v761_v9 = vadd.f32 %v760_v0, %v748_v55 }
 0x182   : > { %v679_v56 = vpop.f32.mrf.mxu2  ;;  %v708_v58 = vpop.f32.mrf.mxu3 }
 0x183   : > { %v680_v60 = vadd.f32 %v679_v56, %v638_v3  ;;  %v709_v62 = vadd.f32 %v708_v58, %v638_v3  ;;  %v311_v3 = vrot.slane %v310_v1, 1 }
 0x185   : > { %v717_v6 = vmax.f32 %v680_v60, 0.0  ;;  %v718_v7 = vmax.f32 %v709_v62, 0.0  ;;  %v312_v13 = vadd.f32 %v311_v3, %v310_v1  ;;  %v826_v1 = vlaneseq }
 0x187   : > { %v749_v12 = vmul.f32 %v741_v59, %v717_v6  ;;  %v750_v17 = vmul.f32 %v741_v59, %v718_v7  ;;  %v769_v35 = vadd.f32 %v459_v4, %v312_v13  ;;  %vm828_vm12 = vcmp.lt.s32.totalorder %v826_v1, 256 }
 0x189   : > { %v753_v18 = vadd.f32 %v752_v8, %v749_v12  ;;  %v762_v19 = vadd.f32 %v761_v9, %v750_v17 }
 0x18b   : > { %v754_v23 = vrot.slane %v753_v18, 4  ;;  %v763_v24 = vrot.slane %v762_v19, 4 }
 0x18d   : > { %v755_v52 = vadd.f32 %v754_v23, %v753_v18  ;;  %v764_v29 = vadd.f32 %v763_v24, %v762_v19 }
 0x18f   : > { %v756_v14 = vrot.slane %v755_v52, 2  ;;  %v765_v22 = vrot.slane %v764_v29, 2 }
 0x191   : > { %v757_v32 = vadd.f32 %v756_v14, %v755_v52  ;;  %v766_v33 = vadd.f32 %v765_v22, %v764_v29 }
 0x193   : > { %v758_v34 = vrot.slane %v757_v32, 1  ;;  %v767_v36 = vrot.slane %v766_v33, 1 }
 0x195   : > { %v759_v27 = vadd.f32 %v758_v34, %v757_v32  ;;  %v768_v25 = vadd.f32 %v767_v36, %v766_v33 }
 0x197   : > { %v771_v2 = vadd.f32 %v769_v35, %v759_v27  ;;  %v772_v28 = vadd.f32 %v770_v39, %v768_v25 }
 0x199   : > { %v780_v26 = vadd.f32 %v779_v41, %v771_v2  ;;  %v781_v42 = vadd.f32 %v779_v41, %v772_v28 }
 0x19b   : > { %v976_v43 = vmul.f32 -1.442695, %v780_v26  ;;  %v977_v44 = vmul.f32 -1.442695, %v781_v42 }
 0x19d   : > { %1048 = vpow2.f32 %v976_v43 }
 0x19e   : > { %1050 = vpow2.f32 %v977_v44 }
 0x1a3   : > { %v1049_v45 = vpop.eup %1048 }
 0x1a4   : > { %v1051_v46 = vpop.eup %1050  ;;  %v788_v47 = vadd.f32 1.0, %v1049_v45 }
 0x1a5   : > { %v789_v48 = vadd.f32 1.0, %v1051_v46 }
 0x1a6   : > { %1052 = vrcp.f32 %v788_v47  ;;  %vm795_vm5 = vweird.f32 %v788_v47  ;;  %v801_v61 = vand.u32 2147483648, %v788_v47  ;;  %v799_v63 = vand.u32 2147483647, %v788_v47 }
 0x1a7   : > { %1054 = vrcp.f32 %v789_v48  ;;  %v816_v57 = vand.u32 2147483648, %v789_v48  ;;  %v814_v60 = vand.u32 2147483647, %v789_v48  ;;  %vm810_vm7 = vweird.f32 %v789_v48 }
 0x1a8   : > { %v802_v59 = vor.u32 1.1754944e-38, %v801_v61  ;;  %vm800_vm11 = vcmp.eq.f32.partialorder %v799_v63, 8.507059e+37 }
 0x1a9   : > { %v817_v5 = vor.u32 1.1754944e-38, %v816_v57  ;;  %vm815_vm9 = vcmp.eq.f32.partialorder %v814_v60, 8.507059e+37 }
 0x1ac   : > { %v1053_v49 = vpop.eup %1052 }
 0x1ad   : > { %v1055_v50 = vpop.eup %1054  ;;  %v791_v53 = vmul.f32 %v1053_v49, %v788_v47  ;;  %vm796_vm3 = vweird.f32 %v1053_v49 }
 0x1ae   : > { %v806_v54 = vmul.f32 %v1055_v50, %v789_v48  ;;  %vm811_vm4 = vweird.f32 %v1055_v50  ;;  %vm1407_vm6 = vmor %vm795_vm5, %vm796_vm3 }
 0x1af   : > { %v792_v55 = vsub.f32 1.0, %v791_v53  ;;  %vm812_vm8 = vmor %vm810_vm7, %vm811_vm4 }
 0x1b0   : > { %v807_v37 = vsub.f32 1.0, %v806_v54 }
 0x1b1   : > { %v793_v56 = vmul.f32 %v1053_v49, %v792_v55 }
 0x1b2   : > { %v808_v58 = vmul.f32 %v1055_v50, %v807_v37 }
 0x1b3   : > { %v794_v38 = vadd.f32 %v1053_v49, %v793_v56 }
 0x1b4   : > { %v809_v0 = vadd.f32 %v1055_v50, %v808_v58 }
 0x1b5   : > { %v798_v6 = vsel %vm1407_vm6, %v1053_v49, %v794_v38 }
 0x1b6   : > { %v813_v7 = vsel %vm812_vm8, %v1055_v50, %v809_v0  ;;  %v803_v10 = vsel %vm800_vm11, %v802_v59, %v798_v6 }
 0x1b7   : > { %v818_v8 = vsel %vm815_vm9, %v817_v5, %v813_v7 }
 0x1b8   : > { %v822_v9 = vrot.slane %v818_v8, 7 }
 0x1ba   : > { %v824_v11 = vsel %vm823_vm10, %v803_v10, %v822_v9 }
 0x1bb   : > { %830 = vst.msk [vmem:[%s300_s6] sm:$0x3] %vm828_vm12, %v824_v11 }
 0x1bc   : > { %1113 = shalt.err (!%p1110_p7)
}
 0x1bd   : > { %997 = dma.vmem_to_hbm [thread:$0]  (%p1247_p11), %s845_s21, 32, %s847_s22, %s832_s24  }
 0x1be PF: > { %s858_s10 = sand.u32 1, %s1140_s26   ;;  %p1004_p8 = pnand %p919_p9, %p1251_p12 }
 0x1bf   : > { %s859_s23 = scalar_lea.sflag [#allocation5], %s858_s10 }
 0x1c0   : > { %p1005_p10 = pneg %p1004_p8 }
 0x1c2   : > { %1135 = dma.done.wait (%p1005_p10), %s859_s23, 32  }
 0x1c3   : > { %1137 = vsyncadd (%p1005_p10), %s859_s23, 4294967264  ;;  %p22_p1 = scmp.ge.s32.totalorder %s1226_s8, 4   ;;  %s1456_s26 = smov %s1144_s27 }
 0x1c4   : > { %s1457_s27 = smov %s1148_s28  ;;  %s1458_s28 = smov %s1238_s11 }
 0x1c5   : > { %s1459_s29 = smov %s1226_s8  ;;  %24 = sbr.rel (!%p22_p1) target bundleno = 8 (0x8), region = 93 }
 0x1ca   :  { %865 = vsyncpa [#allocation4], 1 }
 0x1cb   :  { %867 = vsyncpa [#allocation4 + $0x1], 1 }
 0x1cc   :  { %868 = vsyncpa [#allocation5], 1 }
 0x1cd   :  { %870 = vsyncpa [#allocation5 + $0x1], 1 }

</bundles_post_ra>
